<compile_context>
chip_gen: v6e
topology: v6e:2x2x1
jax: 0.10.0
libtpu: 0.0.40
codegen_flags: <defaults>
</compile_context>

<pallas_src>
import jax
import jax.numpy as jnp
from jax.experimental import pallas as pl
from jax.experimental.pallas import tpu as pltpu

INIT_VAL = 0.3          # config.init_val
_LANES = 128            # vreg lane width
_MAX_TILE_ROWS = 4096   # 4096*128*4 B = 2 MiB per block; x2 double-buffered = 4 MiB VMEM


def _round_up(v, m):
    return -(-v // m) * m


def _fill_kernel(inv_s_ref, o_ref):
    # inv_s_ref: scalar-prefetched SMEM (1,) holding exp(variance * 10),
    #            precomputed in the wrapper (no per-step transcendental).
    # o_ref:     VMEM (tile_rows, 128) lane-dense output block.
    # Pure vector-store broadcast fill; the vst work is fully hidden under the
    # output writeback DMA, which is the binding resource.
    o_ref[...] = jnp.full(o_ref.shape, inv_s_ref[0], o_ref.dtype)


def variance_network_forward(x, variance):
    """Pallas equivalent of VarianceNetwork.forward.

    Args:
      x:        (N, D) array — only its leading dim is used (as in PyTorch).
      variance: scalar parameter (python float or 0-d array).

    Returns:
      (N, 1) float32 array filled with exp(variance * 10).
    """
    n = x.shape[0]

    # Hoist the transcendental out of the kernel.
    inv_s = jnp.exp(jnp.asarray(variance, dtype=jnp.float32) * 10.0).reshape(1)

    if n == 0:
        # Empty batch: nothing to write; previous version hit a ZeroDivisionError here.
        return jnp.zeros((0, 1), jnp.float32)

    # Lane-dense slab covering n elements: (rows_pad, 128) f32, tiled over rows.
    rows = pl.cdiv(n, _LANES)                            # ceil(n / 128)
    num_tiles = pl.cdiv(rows, _MAX_TILE_ROWS)            # grid steps
    tile_rows = _round_up(pl.cdiv(rows, num_tiles), 8)   # balanced tiles, 8-sublane aligned
    rows_pad = num_tiles * tile_rows                     # <8 padded rows per tile

    slab = pl.pallas_call(
        _fill_kernel,
        out_shape=jax.ShapeDtypeStruct((rows_pad, _LANES), jnp.float32),
        grid_spec=pltpu.PrefetchScalarGridSpec(
            num_scalar_prefetch=1,                       # inv_s -> SMEM before the grid
            grid=(num_tiles,),
            in_specs=[],
            out_specs=pl.BlockSpec((tile_rows, _LANES), lambda i, inv_s: (i, 0)),
        ),
        compiler_params=pltpu.CompilerParams(
            dimension_semantics=("parallel",)),          # shards rows across TCs on v7x
    )(inv_s)

    # API boundary only: the flat reshape is layout-preserving (free); the [:n]
    # slice fuses into an elementwise consumer under jit.
    return slab.reshape(-1)[:n].reshape(n, 1)


if __name__ == "__main__":
    key = jax.random.PRNGKey(0)
    # Small example input consistent with the module: batch of 8 points, 3-dim coords.
    x = jax.random.normal(key, (8, 3), dtype=jnp.float32)

    # Deterministic parameter init (matches nn.Parameter(torch.tensor(init_val))).
    variance = jnp.float32(INIT_VAL)

    out = variance_network_forward(x, variance)
    out = jax.block_until_ready(out)

    # Reference check in plain JAX.
    ref = jnp.ones((x.shape[0], 1), jnp.float32) * jnp.exp(variance * 10.0)
    assert out.shape == (x.shape[0], 1), out.shape
    assert jnp.allclose(out, ref, rtol=1e-6, atol=1e-6), (out, ref)

    # Also exercise the empty-batch edge case fixed in this revision.
    empty = variance_network_forward(jnp.zeros((0, 3), jnp.float32), variance)
    assert empty.shape == (0, 1), empty.shape

    print("KERNEL_OK")
</pallas_src>

<mosaic_0001>
module attributes {stable_mosaic.version = 11 : i64} {
  func.func @_fill_kernel(%arg0: i32, %arg1: memref<1xf32, #tpu.memory_space<smem>>, %arg2: memref<8x128xf32, #tpu.memory_space<vmem>>) attributes {dimension_semantics = [#tpu.dimension_semantics<parallel>], iteration_bounds = array<i64: 1>, scalar_prefetch = 1 : i64, scratch_operands = 0 : i64, tpu.core_type = #tpu.core_type<tc>, window_params = [{transform_indices = @transform_0, window_bounds = array<i64: 8, 128>}]} {
    %c0 = arith.constant 0 : index
    %0 = memref.load %arg1[%c0] : memref<1xf32, #tpu.memory_space<smem>>
    %1 = vector.broadcast %0 : f32 to vector<8x128xf32>
    %c0_0 = arith.constant 0 : index
    %c0_1 = arith.constant 0 : index
    %2 = vector.load %arg2[%c0_0, %c0_1] : memref<8x128xf32, #tpu.memory_space<vmem>>, vector<8x128xf32>
    tpu.vector_store %arg2[%c0_0, %c0_1], %1 {strides = array<i32>} : memref<8x128xf32, #tpu.memory_space<vmem>>, vector<8x128xf32>,
    return
  }
  func.func @transform_0(%arg0: i32, %arg1: memref<1xf32, #tpu.memory_space<smem>>) -> (i32, i32) {
    %c0_i32 = arith.constant 0 : i32
    %c0_i32_0 = arith.constant 0 : i32
    return %arg0, %c0_i32 : i32, i32
  }
}

</mosaic_0001>

<bundles_post_ra>
// kernel: tpu_custom_call.1
= control target key start
LH: loop header
LB: loop body
LE: loop exit
PB: predicated region body
PF: predicated region fallthrough
CT: control target
= control target key end

     0   :  { %s65_s0 = inlined_call_operand.<no memory space> [shape: f32[1], index: 0, kind: input, shape index: {}]   ;;  %s66_s1 = inlined_call_operand.hbm [shape: f32[8,128], index: 1, kind: output, shape index: {}]  }
   0x1   :  { %v9_v0 = vstv %s65_s0 }
   0x2   :  { %7 = vsyncpa [#allocation5], 0  ;;  %10 = vst [vmem:[#allocation4] sm:$0xff] %v9_v0  ;;  %s48_s8 = smov [#allocation4]  }
   0x3   :  { %s17_s9 = sshll.u32 %s48_s8, 4  ;;  %s18_s9 = int_to_ptr.vmem [resolvable:$true] %s17_s9 }
   0x4   :  { %s26_s10 = scalar_lea.vmem %s18_s9, 128  ;;  %p31_p1 = scmp.lt.s32.totalorder %s18_s9, %s18_s9 }
   0x5   :  { %p27_p0 = scmp.ne.s32.totalorder %s18_s9, %s26_s10  ;;  %p32_p2 = scmp.lt.s32.totalorder %s26_s10, %s26_s10 }
   0x7   :  { %p33_p3 = por %p32_p2, %p31_p1 }
   0x9   :  { %p34_p4 = pnand %p33_p3, %p27_p0 }
   0xb   :  { %37 = shalt.err (!%p34_p4)
}
   0xc   :  { %20 = dma.vmem_to_hbm [thread:$0]  %s18_s9, 128, %s66_s1, [#allocation5]  }
   0xd   :  { %46 = dma.done.wait [#allocation5], 128  }
   0xe   :  { %47 = vsyncadd [#allocation5], 4294967168 }
   0xf   :  { %24 = vsyncpa [#allocation5], 1 }

</bundles_post_ra>
